<compile_context>
chip_gen: v7x
topology: tpu7x:2x2x1
jax: 0.10.0
libtpu: 0.0.40
codegen_flags: <defaults>
</compile_context>

<pallas_src>
import functools
from typing import NamedTuple

import jax
import jax.numpy as jnp
from jax.experimental import pallas as pl
from jax.experimental.pallas import tpu as pltpu

_INV_SQRT2 = 0.7071067811865476
_MIB = 1024 * 1024


def _round_up(x, m):
    return (x + m - 1) // m * m


def _physical_vmem_bytes():
    """Best-effort physical VMEM query (v5e/v6e: 128 MiB, v7x: 64 MiB)."""
    try:
        info = pltpu.get_tpu_info()
        cap = getattr(info, "vmem_capacity_bytes", None)
        if cap:
            return int(cap)
    except Exception:
        pass
    try:
        kind = jax.devices()[0].device_kind.lower()
        if "v7" in kind:
            return 64 * _MIB
        return 128 * _MIB
    except Exception:
        return 64 * _MIB


def _vmem_estimate(tm, dim_p, th, out_p, x_bytes, w_bytes, out_bytes, grid_k):
    """Double-buffered working-set estimate for one grid step."""
    est = (
        2 * tm * dim_p * x_bytes                 # x tiles
        + 2 * (dim_p * th + th) * w_bytes        # w1 + b1 tiles
        + 2 * (th * out_p + out_p) * w_bytes     # w2 + b2 tiles
        + 2 * tm * out_p * out_bytes             # output tiles
        + tm * th * 4                            # h intermediate (f32)
        + tm * dim_p * w_bytes                   # in-kernel bf16 cast of x
    )
    if grid_k > 1:
        est += tm * out_p * 4                    # f32 accumulator scratch
    return est


class FFNParams(NamedTuple):
    w1: jax.Array   # (dim_p, hid_p), compute dtype
    b1: jax.Array   # (1, hid_p), f32
    w2: jax.Array   # (hid_p, out_p), compute dtype
    b2: jax.Array   # (1, out_p), f32


class FFNConfig(NamedTuple):
    dim: int
    hidden: int
    out_dim: int
    dim_p: int
    hid_p: int
    out_p: int
    th: int            # hidden tile (== hid_p when grid_k == 1)
    tm: int            # max token tile
    weight_bytes: int
    vmem_budget: int


def _ffn_kernel(x_ref, w1_ref, b1_ref, w2_ref, b2_ref, o_ref, acc_ref):
    """Grid = (token tiles, hidden tiles); hidden is the reduction axis."""
    k = pl.program_id(1)

    @pl.when(k == 0)
    def _init():
        acc_ref[...] = jnp.zeros_like(acc_ref)

    # Cast x in VMEM (x streamed from HBM at native width, read once per i).
    x = x_ref[...].astype(w1_ref.dtype)
    # fc1 partial: (tm, dim) @ (dim, th) -> f32 on the MXU.
    h = jnp.dot(x, w1_ref[...], preferred_element_type=jnp.float32)
    h = h + b1_ref[...].astype(jnp.float32)
    # Exact erf-based GELU (torch.nn.GELU() default). Dropout = identity (eval).
    h = 0.5 * h * (1.0 + jax.lax.erf(h * _INV_SQRT2))
    # fc2 partial over this hidden chunk, accumulated in f32 scratch.
    acc_ref[...] += jnp.dot(h.astype(w2_ref.dtype), w2_ref[...],
                            preferred_element_type=jnp.float32)

    @pl.when(k == pl.num_programs(1) - 1)
    def _finalize():
        o_ref[...] = (acc_ref[...] + b2_ref[...].astype(jnp.float32)).astype(o_ref.dtype)


def _ffn_kernel_single(x_ref, w1_ref, b1_ref, w2_ref, b2_ref, o_ref):
    """Specialized grid_k == 1 path: no accumulator scratch, direct write."""
    x = x_ref[...].astype(w1_ref.dtype)
    h = jnp.dot(x, w1_ref[...], preferred_element_type=jnp.float32)
    h = h + b1_ref[...].astype(jnp.float32)
    h = 0.5 * h * (1.0 + jax.lax.erf(h * _INV_SQRT2))
    o = jnp.dot(h.astype(w2_ref.dtype), w2_ref[...],
                preferred_element_type=jnp.float32)
    o_ref[...] = (o + b2_ref[...].astype(jnp.float32)).astype(o_ref.dtype)


def prepare_ffn(w1, b1, w2, b2, *, use_bf16=True, tm=None, th=None,
                feature_align=256):
    """Pad + cast the weights once and pick per-generation tile sizes.

    Weights use (in, out) layout (torch Linear's .weight must be transposed).
    """
    dim, hidden = w1.shape
    out_dim = w2.shape[1]

    vmem_phys = _physical_vmem_bytes()
    vmem_budget = int(vmem_phys * 0.78)          # headroom, esp. v7x's 64 MiB
    big_vmem = vmem_phys >= 100 * _MIB
    if tm is None:
        tm = 640 if big_vmem else 448            # v5e/v6e vs v7x defaults
    if th is None:
        th = 1024 if big_vmem else 512           # large th relieves v5e vst slot
    tm = max(8, _round_up(tm, 8))
    th = max(feature_align, _round_up(th, feature_align))

    dim_p = _round_up(dim, feature_align)
    out_p = _round_up(out_dim, feature_align)

    w_dtype = jnp.bfloat16 if use_bf16 else w1.dtype
    w_bytes = jnp.dtype(w_dtype).itemsize

    # Cap th to the (aligned) hidden size; shrink if a nominal working set
    # would not fit the VMEM budget.
    th = min(th, _round_up(hidden, feature_align))
    while th > feature_align and _vmem_estimate(
            min(tm, 256), dim_p, th, out_p, 4, w_bytes, 4, 2) > vmem_budget:
        th = max(feature_align, _round_up(th // 2, feature_align))
    hid_p = _round_up(hidden, th)

    # Zero-padding is numerically exact: padded w1 cols + b1 give GELU(0)=0,
    # and padded w2 rows are zero, so padded hidden units contribute nothing.
    w1p = jnp.pad(w1, ((0, dim_p - dim), (0, hid_p - hidden))).astype(w_dtype)
    w2p = jnp.pad(w2, ((0, hid_p - hidden), (0, out_p - out_dim))).astype(w_dtype)
    b1p = jnp.pad(b1, (0, hid_p - hidden)).reshape(1, hid_p).astype(jnp.float32)
    b2p = jnp.pad(b2, (0, out_p - out_dim)).reshape(1, out_p).astype(jnp.float32)

    params = FFNParams(w1p, b1p, w2p, b2p)
    config = FFNConfig(dim=int(dim), hidden=int(hidden), out_dim=int(out_dim),
                       dim_p=int(dim_p), hid_p=int(hid_p), out_p=int(out_p),
                       th=int(th), tm=int(tm), weight_bytes=int(w_bytes),
                       vmem_budget=int(vmem_budget))
    return params, config


@functools.partial(jax.jit, static_argnums=(2,))
def feed_forward(x, params, config):
    """x: (..., dim) -> (..., out_dim). Eval-mode FeedForward (dropout = id)."""
    *lead, dim = x.shape
    assert dim == config.dim, "x feature dim does not match prepared weights"
    M = 1
    for s in lead:
        M *= s
    M = max(M, 1)

    out_dtype = x.dtype
    x_bytes = jnp.dtype(x.dtype).itemsize
    out_bytes = jnp.dtype(out_dtype).itemsize
    w_bytes = config.weight_bytes
    dim_p, hid_p, out_p, th = config.dim_p, config.hid_p, config.out_p, config.th
    grid_k = hid_p // th

    # Token tile: <= config.tm, multiple of 8; keep grid_m >= 2 whenever there
    # are enough tokens so both v7x TensorCores get work.
    tm_eff = min(config.tm, _round_up(M, 8))
    if M >= 16:
        tm_eff = min(tm_eff, _round_up(-(-M // 2), 8))
    # Shrink the token tile until the double-buffered working set fits VMEM.
    while tm_eff > 128 and _vmem_estimate(
            tm_eff, dim_p, th, out_p, x_bytes, w_bytes, out_bytes, grid_k
    ) > config.vmem_budget:
        tm_eff = max(128, _round_up(tm_eff // 2, 8))

    M_p = _round_up(M, tm_eff)
    grid_m = M_p // tm_eff

    x2d = jnp.pad(x.reshape(M, dim), ((0, M_p - M), (0, dim_p - dim)))

    vmem_needed = _vmem_estimate(tm_eff, dim_p, th, out_p, x_bytes, w_bytes,
                                 out_bytes, grid_k)
    vmem_limit = int(min(max(int(1.25 * vmem_needed), 32 * _MIB),
                         config.vmem_budget))

    flops = 2 * M_p * dim_p * hid_p + 2 * M_p * hid_p * out_p
    # Weights are re-streamed once per token tile when grid_k > 1 (their index
    # maps ignore i); with grid_k == 1 they stay resident across the grid.
    weight_stream = grid_m if grid_k > 1 else 1
    bytes_accessed = (
        M_p * dim_p * x_bytes
        + weight_stream * ((dim_p * hid_p + hid_p * out_p) * w_bytes
                           + (hid_p + out_p) * 4)
        + M_p * out_p * out_bytes
    )
    cost = pl.CostEstimate(flops=flops, transcendentals=M_p * hid_p,
                           bytes_accessed=bytes_accessed)

    if grid_k == 1:
        out2d = pl.pallas_call(
            _ffn_kernel_single,
            out_shape=jax.ShapeDtypeStruct((M_p, out_p), out_dtype),
            grid_spec=pltpu.PrefetchScalarGridSpec(
                num_scalar_prefetch=0,
                grid=(grid_m,),
                in_specs=[
                    pl.BlockSpec((tm_eff, dim_p), lambda i: (i, 0)),   # x tile
                    pl.BlockSpec((dim_p, hid_p), lambda i: (0, 0)),    # w1 (resident)
                    pl.BlockSpec((1, hid_p), lambda i: (0, 0)),        # b1
                    pl.BlockSpec((hid_p, out_p), lambda i: (0, 0)),    # w2 (resident)
                    pl.BlockSpec((1, out_p), lambda i: (0, 0)),        # b2
                ],
                out_specs=pl.BlockSpec((tm_eff, out_p), lambda i: (i, 0)),
            ),
            compiler_params=pltpu.CompilerParams(
                dimension_semantics=("parallel",),
                vmem_limit_bytes=vmem_limit,
            ),
            cost_estimate=cost,
        )(x2d, params.w1, params.b1, params.w2, params.b2)
    else:
        out2d = pl.pallas_call(
            _ffn_kernel,
            out_shape=jax.ShapeDtypeStruct((M_p, out_p), out_dtype),
            grid_spec=pltpu.PrefetchScalarGridSpec(
                num_scalar_prefetch=0,
                grid=(grid_m, grid_k),
                in_specs=[
                    pl.BlockSpec((tm_eff, dim_p), lambda i, k: (i, 0)),  # x tile
                    pl.BlockSpec((dim_p, th), lambda i, k: (0, k)),      # w1 slice
                    pl.BlockSpec((1, th), lambda i, k: (0, k)),          # b1 slice
                    pl.BlockSpec((th, out_p), lambda i, k: (k, 0)),      # w2 slice
                    pl.BlockSpec((1, out_p), lambda i, k: (0, 0)),       # b2
                ],
                out_specs=pl.BlockSpec((tm_eff, out_p), lambda i, k: (i, 0)),
                scratch_shapes=[pltpu.VMEM((tm_eff, out_p), jnp.float32)],
            ),
            compiler_params=pltpu.CompilerParams(
                dimension_semantics=("parallel", "arbitrary"),
                vmem_limit_bytes=vmem_limit,
            ),
            cost_estimate=cost,
        )(x2d, params.w1, params.b1, params.w2, params.b2)

    out2d = out2d[:M, :config.out_dim]
    return out2d.reshape(*lead, config.out_dim)


def feed_forward_simple(x, w1, b1, w2, b2, *, use_bf16=True, tm=None, th=None):
    """Convenience one-shot wrapper (prepare + apply)."""
    params, config = prepare_ffn(w1, b1, w2, b2, use_bf16=use_bf16, tm=tm, th=th)
    return feed_forward(x, params, config)


def _reference(x, w1, b1, w2, b2):
    h = x @ w1 + b1
    h = 0.5 * h * (1.0 + jax.lax.erf(h * _INV_SQRT2))
    return h @ w2 + b2


if __name__ == "__main__":
    key = jax.random.PRNGKey(0)

    # --- test 1: small, lane-aligned shapes ---
    B, N, dim, hidden_dim = 2, 64, 128, 256
    out_dim = dim  # out_dim=None in the module -> out_dim = dim
    kx, kw1, kb1, kw2, kb2 = jax.random.split(key, 5)
    x = jax.random.normal(kx, (B, N, dim), dtype=jnp.float32)
    w1 = jax.random.normal(kw1, (dim, hidden_dim), dtype=jnp.float32) * 0.02
    b1 = jax.random.normal(kb1, (hidden_dim,), dtype=jnp.float32) * 0.02
    w2 = jax.random.normal(kw2, (hidden_dim, out_dim), dtype=jnp.float32) * 0.02
    b2 = jax.random.normal(kb2, (out_dim,), dtype=jnp.float32) * 0.02
    ref = _reference(x, w1, b1, w2, b2)

    # f32 operand path (tight tolerance).
    out_f32 = feed_forward_simple(x, w1, b1, w2, b2, use_bf16=False)
    jax.block_until_ready(out_f32)
    assert out_f32.shape == (B, N, out_dim)
    assert jnp.allclose(out_f32, ref, atol=1e-4, rtol=1e-4), "f32 mismatch vs reference"

    # default bf16 MXU operand path (f32 accumulation, loose tolerance).
    params, config = prepare_ffn(w1, b1, w2, b2)          # prepared once
    out_bf16 = feed_forward(x, params, config)
    jax.block_until_ready(out_bf16)
    assert jnp.allclose(out_bf16, ref, atol=5e-2, rtol=5e-2), "bf16 path diverged"

    # --- test 2: odd shapes exercise the padding / tail path ---
    B2, N2, d2, h2, o2 = 2, 5, 48, 100, 36
    k2 = jax.random.split(key, 6)
    x2 = jax.random.normal(k2[0], (B2, N2, d2), dtype=jnp.float32)
    w1b = jax.random.normal(k2[1], (d2, h2), dtype=jnp.float32) * 0.02
    b1b = jax.random.normal(k2[2], (h2,), dtype=jnp.float32) * 0.02
    w2b = jax.random.normal(k2[3], (h2, o2), dtype=jnp.float32) * 0.02
    b2b = jax.random.normal(k2[4], (o2,), dtype=jnp.float32) * 0.02
    out2 = feed_forward_simple(x2, w1b, b1b, w2b, b2b, use_bf16=False)
    jax.block_until_ready(out2)
    ref2 = _reference(x2, w1b, b1b, w2b, b2b)
    assert out2.shape == (B2, N2, o2)
    assert jnp.allclose(out2, ref2, atol=1e-4, rtol=1e-4), "padded-shape mismatch vs reference"

    # --- test 3: force grid_k > 1 (accumulator kernel) and grid_m > 1 ---
    h3 = 512
    k3 = jax.random.split(key, 4)
    w1c = jax.random.normal(k3[0], (dim, h3), dtype=jnp.float32) * 0.02
    b1c = jax.random.normal(k3[1], (h3,), dtype=jnp.float32) * 0.02
    w2c = jax.random.normal(k3[2], (h3, out_dim), dtype=jnp.float32) * 0.02
    b2c = jax.random.normal(k3[3], (out_dim,), dtype=jnp.float32) * 0.02
    out3 = feed_forward_simple(x, w1c, b1c, w2c, b2c, use_bf16=False, th=256)
    jax.block_until_ready(out3)
    ref3 = _reference(x, w1c, b1c, w2c, b2c)
    assert jnp.allclose(out3, ref3, atol=1e-4, rtol=1e-4), "multi-k accumulation mismatch"

    print("KERNEL_OK")
</pallas_src>

<mosaic_0001>
module attributes {stable_mosaic.version = 11 : i64} {
  func.func @_ffn_kernel_single(%arg0: i32, %arg1: memref<64x256xf32, #tpu.memory_space<vmem>>, %arg2: memref<256x256xf32, #tpu.memory_space<vmem>>, %arg3: memref<1x256xf32, #tpu.memory_space<vmem>>, %arg4: memref<256x256xf32, #tpu.memory_space<vmem>>, %arg5: memref<1x256xf32, #tpu.memory_space<vmem>>, %arg6: memref<64x256xf32, #tpu.memory_space<vmem>>) attributes {dimension_semantics = [#tpu.dimension_semantics<parallel>], iteration_bounds = array<i64: 2>, scalar_prefetch = 0 : i64, scratch_operands = 0 : i64, tpu.core_type = #tpu.core_type<tc>, window_params = [{transform_indices = @transform_0, window_bounds = array<i64: 64, 256>}, {pipeline_mode = #tpu.pipeline_mode<synchronous>, transform_indices = @transform_1, window_bounds = array<i64: 256, 256>}, {pipeline_mode = #tpu.pipeline_mode<synchronous>, transform_indices = @transform_2, window_bounds = array<i64: 1, 256>}, {pipeline_mode = #tpu.pipeline_mode<synchronous>, transform_indices = @transform_3, window_bounds = array<i64: 256, 256>}, {pipeline_mode = #tpu.pipeline_mode<synchronous>, transform_indices = @transform_4, window_bounds = array<i64: 1, 256>}, {transform_indices = @transform_5, window_bounds = array<i64: 64, 256>}]} {
    %c0 = arith.constant 0 : index
    %c0_0 = arith.constant 0 : index
    %0 = vector.load %arg1[%c0, %c0_0] : memref<64x256xf32, #tpu.memory_space<vmem>>, vector<64x256xf32>
    %c0_1 = arith.constant 0 : index
    %c0_2 = arith.constant 0 : index
    %1 = vector.load %arg2[%c0_1, %c0_2] : memref<256x256xf32, #tpu.memory_space<vmem>>, vector<256x256xf32>
    %cst = arith.constant dense<0.000000e+00> : vector<64x256xf32>
    %2 = tpu.matmul %0, %1, %cst {dimension_numbers = #tpu.dot_dimension_numbers<[1], [0], [0], [1], [0, 0, 1, 1], [], []>} : vector<64x256xf32>, vector<256x256xf32>, vector<64x256xf32> -> vector<64x256xf32>
    %c0_3 = arith.constant 0 : index
    %c0_4 = arith.constant 0 : index
    %3 = vector.load %arg3[%c0_3, %c0_4] : memref<1x256xf32, #tpu.memory_space<vmem>>, vector<1x256xf32>
    %4 = vector.broadcast %3 : vector<1x256xf32> to vector<64x256xf32>
    %5 = arith.addf %2, %4 : vector<64x256xf32>
    %cst_5 = arith.constant 5.000000e-01 : f32
    %6 = vector.broadcast %cst_5 : f32 to vector<64x256xf32>
    %7 = arith.mulf %6, %5 : vector<64x256xf32>
    %cst_6 = arith.constant 0.707106769 : f32
    %8 = vector.broadcast %cst_6 : f32 to vector<64x256xf32>
    %9 = arith.mulf %5, %8 : vector<64x256xf32>
    %10 = math.erf %9 : vector<64x256xf32>
    %cst_7 = arith.constant 1.000000e+00 : f32
    %11 = vector.broadcast %cst_7 : f32 to vector<64x256xf32>
    %12 = arith.addf %11, %10 : vector<64x256xf32>
    %13 = arith.mulf %7, %12 : vector<64x256xf32>
    %c0_8 = arith.constant 0 : index
    %c0_9 = arith.constant 0 : index
    %14 = vector.load %arg4[%c0_8, %c0_9] : memref<256x256xf32, #tpu.memory_space<vmem>>, vector<256x256xf32>
    %cst_10 = arith.constant dense<0.000000e+00> : vector<64x256xf32>
    %15 = tpu.matmul %13, %14, %cst_10 {dimension_numbers = #tpu.dot_dimension_numbers<[1], [0], [0], [1], [0, 0, 1, 1], [], []>} : vector<64x256xf32>, vector<256x256xf32>, vector<64x256xf32> -> vector<64x256xf32>
    %c0_11 = arith.constant 0 : index
    %c0_12 = arith.constant 0 : index
    %16 = vector.load %arg5[%c0_11, %c0_12] : memref<1x256xf32, #tpu.memory_space<vmem>>, vector<1x256xf32>
    %17 = vector.broadcast %16 : vector<1x256xf32> to vector<64x256xf32>
    %18 = arith.addf %15, %17 : vector<64x256xf32>
    %c0_13 = arith.constant 0 : index
    %c0_14 = arith.constant 0 : index
    %19 = vector.load %arg6[%c0_13, %c0_14] : memref<64x256xf32, #tpu.memory_space<vmem>>, vector<64x256xf32>
    tpu.vector_store %arg6[%c0_13, %c0_14], %18 {strides = array<i32>} : memref<64x256xf32, #tpu.memory_space<vmem>>, vector<64x256xf32>,
    return
  }
  func.func @transform_0(%arg0: i32) -> (i32, i32) {
    %c0_i32 = arith.constant 0 : i32
    %c0_i32_0 = arith.constant 0 : i32
    return %arg0, %c0_i32 : i32, i32
  }
  func.func @transform_1(%arg0: i32) -> (i32, i32) {
    %c0_i32 = arith.constant 0 : i32
    %c0_i32_0 = arith.constant 0 : i32
    %c0_i32_1 = arith.constant 0 : i32
    return %c0_i32, %c0_i32_0 : i32, i32
  }
  func.func @transform_2(%arg0: i32) -> (i32, i32) {
    %c0_i32 = arith.constant 0 : i32
    %c0_i32_0 = arith.constant 0 : i32
    %c0_i32_1 = arith.constant 0 : i32
    return %c0_i32, %c0_i32_0 : i32, i32
  }
  func.func @transform_3(%arg0: i32) -> (i32, i32) {
    %c0_i32 = arith.constant 0 : i32
    %c0_i32_0 = arith.constant 0 : i32
    %c0_i32_1 = arith.constant 0 : i32
    return %c0_i32, %c0_i32_0 : i32, i32
  }
  func.func @transform_4(%arg0: i32) -> (i32, i32) {
    %c0_i32 = arith.constant 0 : i32
    %c0_i32_0 = arith.constant 0 : i32
    %c0_i32_1 = arith.constant 0 : i32
    return %c0_i32, %c0_i32_0 : i32, i32
  }
  func.func @transform_5(%arg0: i32) -> (i32, i32) {
    %c0_i32 = arith.constant 0 : i32
    %c0_i32_0 = arith.constant 0 : i32
    return %arg0, %c0_i32 : i32, i32
  }
}

</mosaic_0001>

<bundles_post_ra>
// kernel: feed_forward.1
= control target key start
LH: loop header
LB: loop body
LE: loop exit
PB: predicated region body
PF: predicated region fallthrough
CT: control target
= control target key end

     0   :  { %10 = vsyncpa [#allocation3], 0  ;;  %s1338_s0 = inlined_call_operand.vmem [shape: f32[128,256], index: 0, kind: input, shape index: {}]   ;;  %s1339_s1 = inlined_call_operand.hbm [shape: f32[256,256], index: 1, kind: input, shape index: {}]   ;;  %s1340_s2 = inlined_call_operand.vmem [shape: f32[1,256], index: 2, kind: input, shape index: {}]   ;;  %s1341_s3 = inlined_call_operand.hbm [shape: f32[256,256], index: 3, kind: input, shape index: {}]   ;;  %s1342_s4 = inlined_call_operand.vmem [shape: f32[1,256], index: 4, kind: input, shape index: {}]   ;;  %s1343_s5 = inlined_call_operand.vmem [shape: f32[128,256], index: 5, kind: output, shape index: {}]  }
   0x1   :  { %11 = vsyncpa [#allocation5], 0  ;;  %s1149_s18 = smov 0  }
   0x2 LB: > { %s833_s19 = sadd.s32 4294967295, %s1113_s18   ;;  %p835_p0 = scmp.ge.s32.totalorder %s1113_s18, 1  ;;  %s1113_s18 = sphi %s1149_s18, %s17_s18  }
   0x3   : > { %p158_p1 = scmp.lt.s32.totalorder %s1113_s18, 3  ;;  %s1115_s20 = smov [#allocation2]  }
   0x4   : > { %s170_s21 = sshll.u32 %s1115_s20, 4  ;;  %p1163_p3 = scmp.eq.s32.totalorder %s833_s19, 0  ;;  %s171_s21 = int_to_ptr.vmem [resolvable:$true] %s170_s21 }
   0x5   : > { %p1157_p2 = pnand %p835_p0, %p158_p1  ;;  %s1116_s24 = smov [#allocation4]  }
   0x6   : > { %s1348_s23 = scalar_select %p1163_p3, 1, 0 }
   0x7   : > { %s1347_s22 = scalar_select %p1157_p2, 1, 0 }
   0x8   : > { %p988_p4 = pneg %p1157_p2  ;;  %s186_s25 = sshll.u32 %s1116_s24, 4  ;;  %s1175_s25 = int_to_ptr.vmem [resolvable:$true] %s186_s25 }
   0x9   : > { %s1043_s29 = scalar_lea.hbm %s1339_s1, 8192 }
   0xa   : > { %p1171_p5 = pnand %p1163_p3, %p988_p4  ;;  %p1044_p6 = scmp.ne.s32.totalorder %s1339_s1, %s1043_s29 }
   0xb   : > { %p1050_p10 = scmp.lt.u32.totalorder %s1043_s29, %s1339_s1 }
   0xc   : > { %p1045_p7 = pneg %p1171_p5 }
   0xe   : > { %p1046_p8 = pnand %p1045_p7, %p1044_p6 }
  0x10   : > { %p1047_p9 = pneg %p1046_p8 }
  0x12   : > { %p1052_p11 = pnand %p1050_p10, %p1047_p9 }
  0x14   : > { %1055 = shalt.err (!%p1052_p11)
}
  0x15   : > { %s1056_s9 = scalar_lea.vmem %s171_s21, 8192  ;;  %p1064_p1 = scmp.lt.s32.totalorder %s171_s21, %s171_s21 }
  0x16   : > { %p1057_p12 = scmp.ne.s32.totalorder %s171_s21, %s1056_s9  ;;  %p1065_p4 = scmp.lt.s32.totalorder %s1056_s9, %s1056_s9 }
  0x18   : > { %p1059_p13 = pnand %p1057_p12, %p1045_p7  ;;  %p1066_p3 = por %p1065_p4, %p1064_p1 }
  0x1a   : > { %p1060_p0 = pneg %p1059_p13 }
  0x1c   : > { %p1067_p2 = pnand %p1066_p3, %p1060_p0 }
  0x1e   : > { %1070 = shalt.err (!%p1067_p2)
}
  0x1f   : > { %s1117_s10 = smov 256   ;;  %s1118_s11 = smov 16  }
  0x20   : > { %991 = dma.hbm_to_vmem [thread:$0]  (!%p1171_p5), %s1339_s1, 8192, %s171_s21, [#allocation3], %s1117_s10, %s1117_s10, %s1118_s11  }
  0x21   : > { %s1071_s16 = scalar_lea.hbm %s1341_s3, 8192 }
  0x22   : > { %p1072_p6 = scmp.ne.s32.totalorder %s1341_s3, %s1071_s16  ;;  %p1078_p8 = scmp.lt.u32.totalorder %s1071_s16, %s1341_s3 }
  0x24   : > { %p1074_p2 = pnand %p1072_p6, %p1045_p7 }
  0x26   : > { %p1075_p3 = pneg %p1074_p2 }
  0x28   : > { %p1080_p9 = pnand %p1078_p8, %p1075_p3 }
  0x2a   : > { %1083 = shalt.err (!%p1080_p9)
}
  0x2b   : > { %s1084_s21 = scalar_lea.vmem %s1175_s25, 8192  ;;  %p1092_p13 = scmp.lt.s32.totalorder %s1175_s25, %s1175_s25 }
  0x2c   : > { %p1085_p10 = scmp.ne.s32.totalorder %s1175_s25, %s1084_s21  ;;  %p1093_p0 = scmp.lt.s32.totalorder %s1084_s21, %s1084_s21 }
  0x2e   : > { %p1087_p11 = pnand %p1085_p10, %p1045_p7  ;;  %p1094_p1 = por %p1093_p0, %p1092_p13 }
  0x30   : > { %p1088_p12 = pneg %p1087_p11 }
  0x32   : > { %p1095_p4 = pnand %p1094_p1, %p1088_p12 }
  0x34   : > { %1098 = shalt.err (!%p1095_p4)
}
  0x35   : > { %994 = dma.hbm_to_vmem [thread:$0]  (!%p1171_p5), %s1341_s3, 8192, %s1175_s25, [#allocation5], %s1117_s10, %s1117_s10, %s1118_s11  }
  0x36   : > { %p1350_p6 = scmp.ne.s32.totalorder %s1347_s22, 0 }
  0x37   : > { %p1351_p2 = scmp.ne.s32.totalorder (!%p1350_p6), %s1348_s23, 0 }
  0x38   : > { %215 = sbr.rel (%p1350_p6) target bundleno = 610 (0x262), region = 40 }
  0x3f   : > { %1104 = dma.done.wait (%p1351_p2), [#allocation3], 8192  }
  0x40   : > { %1106 = vsyncadd (%p1351_p2), [#allocation3], 4294959104 }
  0x41   : > { %1108 = dma.done.wait (%p1351_p2), [#allocation5], 8192  }
  0x42   : > { %1110 = vsyncadd (%p1351_p2), [#allocation5], 4294959104  ;;  %v280_v0 = vld [vmem:[#allocation2 + $0x8] sm:$0xff]  ;;  %v282_v1 = vld [vmem:[#allocation2 + $0x18] sm:$0xff]  ;;  %s842_s22 = sshll.u32 %s833_s19, 3 }
  0x43   : > { %v279_v2 = vld [vmem:[#allocation2] sm:$0xff]  ;;  %v852_v3 = vpack.c.bf16 %v282_v1, %v280_v0  ;;  %v281_v4 = vld [vmem:[#allocation2 + $0x10] sm:$0xff]  ;;  %v284_v5 = vld [vmem:[#allocation2 + $0x28] sm:$0xff]  ;;  %p250_p5 = scmp.lt.s32.totalorder %s842_s22, 15 }
  0x44   : > { %v286_v6 = vld [vmem:[#allocation2 + $0x38] sm:$0xff]  ;;  %v854_v7 = vpack.c.bf16 %v281_v4, %v279_v2  ;;  %v283_v9 = vld [vmem:[#allocation2 + $0x20] sm:$0xff]  ;;  %v285_v10 = vld [vmem:[#allocation2 + $0x30] sm:$0xff] }
  0x45   : > { %v856_v8 = vpack.c.bf16 %v286_v6, %v284_v5  ;;  %v288_v11 = vld [vmem:[#allocation2 + $0x48] sm:$0xff]  ;;  %853 = vmatprep.subr.bf16.mxu0 %v852_v3  ;;  %v290_v12 = vld [vmem:[#allocation2 + $0x58] sm:$0xff]  ;;  %v858_v13 = vpack.c.bf16 %v285_v10, %v283_v9  ;;  %v287_v15 = vld [vmem:[#allocation2 + $0x40] sm:$0xff]  ;;  %s1353_s22 = smov (!%p250_p5, %s842_s22), 15 }
  0x46   : > { %855 = vmatpush1.bf16.msra.mxu0 %v854_v7  ;;  %v860_v14 = vpack.c.bf16 %v290_v12, %v288_v11  ;;  %v289_v16 = vld [vmem:[#allocation2 + $0x50] sm:$0xff]  ;;  %v292_v17 = vld [vmem:[#allocation2 + $0x68] sm:$0xff]  ;;  %v294_v18 = vld [vmem:[#allocation2 + $0x78] sm:$0xff]  ;;  %s850_s19 = sshll.u32 %s1353_s22, 4 }
  0x47   : > { %857 = vmatprep.subr.bf16.mxu0 %v856_v8  ;;  %v862_v19 = vpack.c.bf16 %v289_v16, %v287_v15  ;;  %v864_v20 = vpack.c.bf16 %v294_v18, %v292_v17  ;;  %v291_v21 = vld [vmem:[#allocation2 + $0x60] sm:$0xff]  ;;  %v293_v22 = vld [vmem:[#allocation2 + $0x70] sm:$0xff]  ;;  %v296_v23 = vld [vmem:[#allocation2 + $0x88] sm:$0xff]  ;;  %s1244_s26 = scalar_lea.vmem %s1338_s0, %s850_s19  ;;  %s1317_s11 = scalar_lea.vmem %s1343_s5, %s850_s19 }
  0x48   : > { %v298_v24 = vld [vmem:[#allocation2 + $0x98] sm:$0xff]  ;;  %v866_v25 = vpack.c.bf16 %v293_v22, %v291_v21  ;;  %v295_v27 = vld [vmem:[#allocation2 + $0x80] sm:$0xff]  ;;  %v297_v28 = vld [vmem:[#allocation2 + $0x90] sm:$0xff] }
  0x49   : > { %v868_v26 = vpack.c.bf16 %v298_v24, %v296_v23  ;;  %v300_v29 = vld [vmem:[#allocation2 + $0xa8] sm:$0xff]  ;;  %v302_v30 = vld [vmem:[#allocation2 + $0xb8] sm:$0xff]  ;;  %v870_v31 = vpack.c.bf16 %v297_v28, %v295_v27  ;;  %v299_v33 = vld [vmem:[#allocation2 + $0xa0] sm:$0xff] }
  0x4a   : > { %859 = vmatpush1.bf16.msra.mxu0 %v858_v13  ;;  %v872_v32 = vpack.c.bf16 %v302_v30, %v300_v29  ;;  %v301_v34 = vld [vmem:[#allocation2 + $0xb0] sm:$0xff]  ;;  %v304_v35 = vld [vmem:[#allocation2 + $0xc8] sm:$0xff]  ;;  %v306_v36 = vld [vmem:[#allocation2 + $0xd8] sm:$0xff] }
  0x4b   : > { %861 = vmatprep.subr.bf16.mxu0 %v860_v14  ;;  %v874_v37 = vpack.c.bf16 %v301_v34, %v299_v33  ;;  %v876_v38 = vpack.c.bf16 %v306_v36, %v304_v35  ;;  %v303_v39 = vld [vmem:[#allocation2 + $0xc0] sm:$0xff]  ;;  %v305_v40 = vld [vmem:[#allocation2 + $0xd0] sm:$0xff]  ;;  %v264_v41 = vld [vmem:[%s1244_s26 + $0x8] sm:$0xff] }
  0x4c   : > { %v308_v42 = vld [vmem:[#allocation2 + $0xe8] sm:$0xff]  ;;  %v310_v43 = vld [vmem:[#allocation2 + $0xf8] sm:$0xff]  ;;  %419 = vmatprep.mubr.f32.mxu0 %v264_v41  ;;  %v878_v44 = vpack.c.bf16 %v305_v40, %v303_v39  ;;  %v307_v46 = vld [vmem:[#allocation2 + $0xe0] sm:$0xff] }
  0x4d   : > { %v880_v45 = vpack.c.bf16 %v310_v43, %v308_v42  ;;  %v309_v47 = vld [vmem:[#allocation2 + $0xf0] sm:$0xff]  ;;  %v312_v48 = vld [vmem:[#allocation2 + $0x108] sm:$0xff]  ;;  %v314_v49 = vld [vmem:[#allocation2 + $0x118] sm:$0xff] }
  0x4e   : > { %863 = vmatpush1.bf16.msra.mxu0 %v862_v19  ;;  %v549_v50 = vld [vmem:[#allocation4 + $0x8] sm:$0xff]  ;;  %v311_v51 = vld [vmem:[#allocation2 + $0x100] sm:$0xff]  ;;  %v313_v52 = vld [vmem:[#allocation2 + $0x110] sm:$0xff]  ;;  %v882_v56 = vpack.c.bf16 %v309_v47, %v307_v46  ;;  %v884_v62 = vpack.c.bf16 %v314_v49, %v312_v48 }
  0x4f   : > { %865 = vmatprep.subr.bf16.mxu0 %v864_v20  ;;  %v551_v53 = vld [vmem:[#allocation4 + $0x18] sm:$0xff]  ;;  %v548_v54 = vld [vmem:[#allocation4] sm:$0xff]  ;;  %v550_v55 = vld [vmem:[#allocation4 + $0x10] sm:$0xff]  ;;  %v886_v6 = vpack.c.bf16 %v313_v52, %v311_v51 }
  0x50   : > { %v916_v57 = vpack.c.bf16 %v551_v53, %v549_v50  ;;  %v918_v58 = vpack.c.bf16 %v550_v55, %v548_v54  ;;  %v553_v59 = vld [vmem:[#allocation4 + $0x28] sm:$0xff]  ;;  %v555_v60 = vld [vmem:[#allocation4 + $0x38] sm:$0xff]  ;;  %v552_v61 = vld [vmem:[#allocation4 + $0x20] sm:$0xff] }
  0x51   : > { %v920_v63 = vpack.c.bf16 %v555_v60, %v553_v59  ;;  %v554_v0 = vld [vmem:[#allocation4 + $0x30] sm:$0xff]  ;;  %v557_v1 = vld [vmem:[#allocation4 + $0x48] sm:$0xff]  ;;  %v559_v2 = vld [vmem:[#allocation4 + $0x58] sm:$0xff] }
  0x52   : > { %867 = vmatpush1.bf16.msra.mxu0 %v866_v25  ;;  %v316_v3 = vld [vmem:[#allocation2 + $0x128] sm:$0xff]  ;;  %v318_v4 = vld [vmem:[#allocation2 + $0x138] sm:$0xff]  ;;  %917 = vmatprep.subr.bf16.mxu1 %v916_v57  ;;  %v922_v5 = vpack.c.bf16 %v554_v0, %v552_v61  ;;  %v315_v7 = vld [vmem:[#allocation2 + $0x120] sm:$0xff]  ;;  %v924_v8 = vpack.c.bf16 %v559_v2, %v557_v1 }
  0x53   : > { %869 = vmatprep.subr.bf16.mxu0 %v868_v26  ;;  %919 = vmatpush1.bf16.msra.mxu1 %v918_v58  ;;  %v556_v9 = vld [vmem:[#allocation4 + $0x40] sm:$0xff]  ;;  %v558_v10 = vld [vmem:[#allocation4 + $0x50] sm:$0xff]  ;;  %v888_v11 = vpack.c.bf16 %v318_v4, %v316_v3  ;;  %v561_v13 = vld [vmem:[#allocation4 + $0x68] sm:$0xff] }
  0x54   : > { %921 = vmatprep.subr.bf16.mxu1 %v920_v63  ;;  %v317_v12 = vld [vmem:[#allocation2 + $0x130] sm:$0xff]  ;;  %v563_v14 = vld [vmem:[#allocation4 + $0x78] sm:$0xff]  ;;  %v320_v15 = vld [vmem:[#allocation2 + $0x148] sm:$0xff]  ;;  %v926_v17 = vpack.c.bf16 %v558_v10, %v556_v9 }
  0x55   : > { %v322_v16 = vld [vmem:[#allocation2 + $0x158] sm:$0xff]  ;;  %v890_v18 = vpack.c.bf16 %v317_v12, %v315_v7  ;;  %v319_v19 = vld [vmem:[#allocation2 + $0x140] sm:$0xff]  ;;  %v928_v20 = vpack.c.bf16 %v563_v14, %v561_v13  ;;  %v562_v22 = vld [vmem:[#allocation4 + $0x70] sm:$0xff] }
  0x56   : > { %871 = vmatpush1.bf16.msra.mxu0 %v870_v31  ;;  %v560_v21 = vld [vmem:[#allocation4 + $0x60] sm:$0xff]  ;;  %v892_v23 = vpack.c.bf16 %v322_v16, %v320_v15  ;;  %v321_v24 = vld [vmem:[#allocation2 + $0x150] sm:$0xff]  ;;  %v565_v25 = vld [vmem:[#allocation4 + $0x88] sm:$0xff] }
  0x57   : > { %873 = vmatprep.subr.bf16.mxu0 %v872_v32  ;;  %923 = vmatpush1.bf16.msra.mxu1 %v922_v5  ;;  %v567_v26 = vld [vmem:[#allocation4 + $0x98] sm:$0xff]  ;;  %v324_v27 = vld [vmem:[#allocation2 + $0x168] sm:$0xff]  ;;  %v930_v29 = vpack.c.bf16 %v562_v22, %v560_v21  ;;  %v894_v30 = vpack.c.bf16 %v321_v24, %v319_v19  ;;  %v323_v31 = vld [vmem:[#allocation2 + $0x160] sm:$0xff] }
  0x58   : > { %925 = vmatprep.subr.bf16.mxu1 %v924_v8  ;;  %v326_v28 = vld [vmem:[#allocation2 + $0x178] sm:$0xff]  ;;  %v932_v32 = vpack.c.bf16 %v567_v26, %v565_v25  ;;  %v564_v33 = vld [vmem:[#allocation4 + $0x80] sm:$0xff]  ;;  %v566_v34 = vld [vmem:[#allocation4 + $0x90] sm:$0xff] }
  0x59   : > { %v896_v35 = vpack.c.bf16 %v326_v28, %v324_v27  ;;  %v325_v36 = vld [vmem:[#allocation2 + $0x170] sm:$0xff]  ;;  %v328_v39 = vld [vmem:[#allocation2 + $0x188] sm:$0xff]  ;;  %v330_v40 = vld [vmem:[#allocation2 + $0x198] sm:$0xff]  ;;  %v934_v41 = vpack.c.bf16 %v566_v34, %v564_v33 }
  0x5a   : > { %875 = vmatpush1.bf16.msra.mxu0 %v874_v37  ;;  %v569_v37 = vld [vmem:[#allocation4 + $0xa8] sm:$0xff]  ;;  %v898_v42 = vpack.c.bf16 %v325_v36, %v323_v31  ;;  %v327_v43 = vld [vmem:[#allocation2 + $0x180] sm:$0xff]  ;;  %v570_v46 = vld [vmem:[#allocation4 + $0xb0] sm:$0xff]  ;;  %v900_v47 = vpack.c.bf16 %v330_v40, %v328_v39 }
  0x5b   : > { %877 = vmatprep.subr.bf16.mxu0 %v876_v38  ;;  %927 = vmatpush1.bf16.msra.mxu1 %v926_v17  ;;  %v571_v38 = vld [vmem:[#allocation4 + $0xb8] sm:$0xff]  ;;  %v329_v48 = vld [vmem:[#allocation2 + $0x190] sm:$0xff]  ;;  %v573_v49 = vld [vmem:[#allocation4 + $0xc8] sm:$0xff] }
  0x5c   : > { %929 = vmatprep.subr.bf16.mxu1 %v928_v20  ;;  %v575_v50 = vld [vmem:[#allocation4 + $0xd8] sm:$0xff]  ;;  %v332_v51 = vld [vmem:[#allocation2 + $0x1a8] sm:$0xff]  ;;  %v902_v54 = vpack.c.bf16 %v329_v48, %v327_v43  ;;  %v331_v55 = vld [vmem:[#allocation2 + $0x1a0] sm:$0xff] }
  0x5d   : > { %v334_v52 = vld [vmem:[#allocation2 + $0x1b8] sm:$0xff]  ;;  %v572_v57 = vld [vmem:[#allocation4 + $0xc0] sm:$0xff]  ;;  %v574_v58 = vld [vmem:[#allocation4 + $0xd0] sm:$0xff] }
  0x5e   : > { %879 = vmatpush1.bf16.msra.mxu0 %v878_v44  ;;  %v936_v44 = vpack.c.bf16 %v571_v38, %v569_v37  ;;  %v904_v59 = vpack.c.bf16 %v334_v52, %v332_v51  ;;  %v333_v60 = vld [vmem:[#allocation2 + $0x1b0] sm:$0xff]  ;;  %v577_v61 = vld [vmem:[#allocation4 + $0xe8] sm:$0xff]  ;;  %v338_v0 = vld [vmem:[#allocation2 + $0x1d8] sm:$0xff]  ;;  %v942_v1 = vpack.c.bf16 %v574_v58, %v572_v57 }
  0x5f   : > { %881 = vmatprep.subr.bf16.mxu0 %v880_v45  ;;  %931 = vmatpush1.bf16.msra.mxu1 %v930_v29  ;;  %v568_v45 = vld [vmem:[#allocation4 + $0xa0] sm:$0xff]  ;;  %v336_v63 = vld [vmem:[#allocation2 + $0x1c8] sm:$0xff]  ;;  %v906_v2 = vpack.c.bf16 %v333_v60, %v331_v55  ;;  %v337_v8 = vld [vmem:[#allocation2 + $0x1d0] sm:$0xff] }
  0x60   : > { %933 = vmatprep.subr.bf16.mxu1 %v932_v32  ;;  %v938_v53 = vpack.c.bf16 %v570_v46, %v568_v45  ;;  %v335_v3 = vld [vmem:[#allocation2 + $0x1c0] sm:$0xff]  ;;  %v908_v7 = vpack.c.bf16 %v338_v0, %v336_v63  ;;  %v581_v9 = vld [vmem:[#allocation4 + $0x108] sm:$0xff]  ;;  %v583_v10 = vld [vmem:[#allocation4 + $0x118] sm:$0xff] }
  0x61   : > { %v576_v5 = vld [vmem:[#allocation4 + $0xe0] sm:$0xff]  ;;  %v342_v12 = vld [vmem:[#allocation2 + $0x1f8] sm:$0xff]  ;;  %v910_v14 = vpack.c.bf16 %v337_v8, %v335_v3  ;;  %v948_v16 = vpack.c.bf16 %v583_v10, %v581_v9  ;;  %v341_v20 = vld [vmem:[#allocation2 + $0x1f0] sm:$0xff] }
  0x62   : > { %883 = vmatpush1.bf16.msra.mxu0 %v882_v56  ;;  %v940_v56 = vpack.c.bf16 %v575_v50, %v573_v49  ;;  %v339_v15 = vld [vmem:[#allocation2 + $0x1e0] sm:$0xff]  ;;  %v585_v21 = vld [vmem:[#allocation4 + $0x128] sm:$0xff]  ;;  %v587_v22 = vld [vmem:[#allocation4 + $0x138] sm:$0xff] }
  0x63   : > { %885 = vmatprep.subr.bf16.mxu0 %v884_v62  ;;  %935 = vmatpush1.bf16.msra.mxu1 %v934_v41  ;;  %v579_v62 = vld [vmem:[#allocation4 + $0xf8] sm:$0xff]  ;;  %v580_v17 = vld [vmem:[#allocation4 + $0x100] sm:$0xff]  ;;  %v914_v24 = vpack.c.bf16 %v341_v20, %v339_v15  ;;  %v952_v25 = vpack.c.bf16 %v587_v22, %v585_v21  ;;  %v586_v27 = vld [vmem:[#allocation4 + $0x130] sm:$0xff] }
  0x64   : > { %937 = vmatprep.subr.bf16.mxu1 %v936_v44  ;;  %v944_v4 = vpack.c.bf16 %v579_v62, %v577_v61  ;;  %v584_v26 = vld [vmem:[#allocation4 + $0x120] sm:$0xff]  ;;  %v589_v28 = vld [vmem:[#allocation4 + $0x148] sm:$0xff]  ;;  %v591_v29 = vld [vmem:[#allocation4 + $0x158] sm:$0xff] }
  0x65   : > { %v263_v31 = vld [vmem:[%s1244_s26] sm:$0xff]  ;;  %v956_v32 = vpack.c.bf16 %v591_v29, %v589_v28  ;;  %v590_v34 = vld [vmem:[#allocation4 + $0x150] sm:$0xff]  ;;  %v268_v38 = vld [vmem:[%s1244_s26 + $0x28] sm:$0xff] }
  0x66   : > { %887 = vmatpush1.bf16.msra.mxu0 %v886_v6  ;;  %v578_v6 = vld [vmem:[#allocation4 + $0xf0] sm:$0xff]  ;;  %v588_v33 = vld [vmem:[#allocation4 + $0x140] sm:$0xff]  ;;  %v270_v40 = vld [vmem:[%s1244_s26 + $0x38] sm:$0xff] }
  0x67   : > { %889 = vmatprep.subr.bf16.mxu0 %v888_v11  ;;  %939 = vmatpush1.bf16.msra.mxu1 %v938_v53  ;;  %v340_v11 = vld [vmem:[#allocation2 + $0x1e8] sm:$0xff]  ;;  %v946_v13 = vpack.c.bf16 %v578_v6, %v576_v5  ;;  %v958_v36 = vpack.c.bf16 %v590_v34, %v588_v33  ;;  %v265_v37 = vld [vmem:[%s1244_s26 + $0x10] sm:$0xff]  ;;  %v267_v39 = vld [vmem:[%s1244_s26 + $0x20] sm:$0xff] }
  0x68   : > { %941 = vmatprep.subr.bf16.mxu1 %v940_v56  ;;  %v912_v19 = vpack.c.bf16 %v342_v12, %v340_v11  ;;  %v269_v41 = vld [vmem:[%s1244_s26 + $0x30] sm:$0xff]  ;;  %v271_v43 = vld [vmem:[%s1244_s26 + $0x40] sm:$0xff]  ;;  %v274_v44 = vld [vmem:[%s1244_s26 + $0x58] sm:$0xff] }
  0x69   : > { %v273_v45 = vld [vmem:[%s1244_s26 + $0x50] sm:$0xff]  ;;  %v276_v46 = vld [vmem:[%s1244_s26 + $0x68] sm:$0xff]  ;;  %v278_v48 = vld [vmem:[%s1244_s26 + $0x78] sm:$0xff] }
  0x6a   : > { %891 = vmatpush1.bf16.msra.mxu0 %v890_v18  ;;  %v582_v18 = vld [vmem:[#allocation4 + $0x110] sm:$0xff]  ;;  %v593_v50 = vld [vmem:[#allocation4 + $0x168] sm:$0xff]  ;;  %v595_v51 = vld [vmem:[#allocation4 + $0x178] sm:$0xff] }
  0x6b   : > { %893 = vmatprep.subr.bf16.mxu0 %v892_v23  ;;  %943 = vmatpush1.bf16.msra.mxu1 %v942_v1  ;;  %v950_v23 = vpack.c.bf16 %v582_v18, %v580_v17  ;;  %v277_v49 = vld [vmem:[%s1244_s26 + $0x70] sm:$0xff]  ;;  %v960_v52 = vpack.c.bf16 %v595_v51, %v593_v50  ;;  %v592_v53 = vld [vmem:[#allocation4 + $0x160] sm:$0xff]  ;;  %v597_v56 = vld [vmem:[#allocation4 + $0x188] sm:$0xff] }
  0x6c   : > { %945 = vmatprep.subr.bf16.mxu1 %v944_v4  ;;  %v599_v57 = vld [vmem:[#allocation4 + $0x198] sm:$0xff]  ;;  %v598_v60 = vld [vmem:[#allocation4 + $0x190] sm:$0xff]  ;;  %v601_v62 = vld [vmem:[#allocation4 + $0x1a8] sm:$0xff] }
  0x6d   : > { %v964_v58 = vpack.c.bf16 %v599_v57, %v597_v56  ;;  %v603_v63 = vld [vmem:[#allocation4 + $0x1b8] sm:$0xff]  ;;  %v600_v1 = vld [vmem:[#allocation4 + $0x1a0] sm:$0xff]  ;;  %v605_v4 = vld [vmem:[#allocation4 + $0x1c8] sm:$0xff] }
  0x6e   : > { %895 = vmatpush1.bf16.msra.mxu0 %v894_v30  ;;  %v954_v30 = vpack.c.bf16 %v586_v27, %v584_v26  ;;  %v968_v0 = vpack.c.bf16 %v603_v63, %v601_v62  ;;  %v607_v5 = vld [vmem:[#allocation4 + $0x1d8] sm:$0xff]  ;;  %v606_v8 = vld [vmem:[#allocation4 + $0x1d0] sm:$0xff]  ;;  %v609_v10 = vld [vmem:[#allocation4 + $0x1e8] sm:$0xff] }
  0x6f   : > { %897 = vmatprep.subr.bf16.mxu0 %v896_v35  ;;  %947 = vmatpush1.bf16.msra.mxu1 %v946_v13  ;;  %v266_v35 = vld [vmem:[%s1244_s26 + $0x18] sm:$0xff]  ;;  %v972_v6 = vpack.c.bf16 %v607_v5, %v605_v4  ;;  %v608_v13 = vld [vmem:[#allocation4 + $0x1e0] sm:$0xff] }
  0x70   : > { %949 = vmatprep.subr.bf16.mxu1 %v948_v16  ;;  %v611_v11 = vld [vmem:[#allocation4 + $0x1f8] sm:$0xff]  ;;  %v345_v16 = vlaneseq }
  0x71   : > { %v976_v12 = vpack.c.bf16 %v611_v11, %v609_v10 }
  0x72   : > { %899 = vmatpush1.bf16.msra.mxu0 %v898_v42  ;;  %v272_v42 = vld [vmem:[%s1244_s26 + $0x48] sm:$0xff]  ;;  %v1262_v17 = vshrl.u32 %v345_v16, 7 }
  0x73   : > { %901 = vmatprep.subr.bf16.mxu0 %v900_v47  ;;  %951 = vmatpush1.bf16.msra.mxu1 %v950_v23  ;;  %v275_v47 = vld [vmem:[%s1244_s26 + $0x60] sm:$0xff] }
  0x74   : > { %953 = vmatprep.subr.bf16.mxu1 %v952_v25  ;;  %v347_v18 = vsub.s32 0, %v1262_v17  ;;  %v351_v20 = vsub.s32 1, %v1262_v17 }
  0x76   : > { %903 = vmatpush1.bf16.msra.mxu0 %v902_v54  ;;  %v594_v54 = vld [vmem:[#allocation4 + $0x170] sm:$0xff] }
  0x77   : > { %905 = vmatprep.subr.bf16.mxu0 %v904_v59  ;;  %955 = vmatpush1.bf16.msra.mxu1 %v954_v30  ;;  %v962_v55 = vpack.c.bf16 %v594_v54, %v592_v53  ;;  %v596_v59 = vld [vmem:[#allocation4 + $0x180] sm:$0xff] }
  0x78   : > { %957 = vmatprep.subr.bf16.mxu1 %v956_v32  ;;  %v966_v61 = vpack.c.bf16 %v598_v60, %v596_v59 }
  0x7a   : > { %907 = vmatpush1.bf16.msra.mxu0 %v906_v2  ;;  %v602_v2 = vld [vmem:[#allocation4 + $0x1b0] sm:$0xff] }
  0x7b   : > { %909 = vmatprep.subr.bf16.mxu0 %v908_v7  ;;  %959 = vmatpush1.bf16.msra.mxu1 %v958_v36  ;;  %v970_v3 = vpack.c.bf16 %v602_v2, %v600_v1  ;;  %v604_v7 = vld [vmem:[#allocation4 + $0x1c0] sm:$0xff] }
  0x7c   : > { %961 = vmatprep.subr.bf16.mxu1 %v960_v52  ;;  %v974_v9 = vpack.c.bf16 %v606_v8, %v604_v7 }
  0x7e   : > { %911 = vmatpush1.bf16.msra.mxu0 %v910_v14  ;;  %v610_v14 = vld [vmem:[#allocation4 + $0x1f0] sm:$0xff] }
  0x7f   : > { %913 = vmatprep.subr.bf16.mxu0 %v912_v19  ;;  %963 = vmatpush1.bf16.msra.mxu1 %v962_v55  ;;  %v978_v15 = vpack.c.bf16 %v610_v14, %v608_v13  ;;  %v343_v19 = vld [vmem:[%s1340_s2] sm:$0x3] }
  0x80   : > { %965 = vmatprep.subr.bf16.mxu1 %v964_v58  ;;  %v1271_v21 = vrot.slane %v343_v19, %v347_v18  ;;  %v1275_v22 = vrot.slane %v343_v19, %v351_v20 }
  0x82   : > { %915 = vmatpush1.bf16.msra.mxu0 %v914_v24 }
  0x83   : > { %967 = vmatpush1.bf16.msra.mxu1 %v966_v61 }
  0x84   : > { %969 = vmatprep.subr.bf16.mxu1 %v968_v0 }
  0x85   : > { %420 = vmatmul.mubr.f32.vlgmr.msra.gmra.mrb[0].mxu0 %v263_v31 }
  0x86   : > { %425 = vmatprep.mubr.f32.mxu0 %v266_v35 }
  0x87   : > { %971 = vmatpush1.bf16.msra.mxu1 %v970_v3 }
  0x88   : > { %973 = vmatprep.subr.bf16.mxu1 %v972_v6 }
  0x89   : > { %426 = vmatmul.mubr.f32.gmra.mrb[2].mxu0 %v265_v37 }
  0x8a   : > { %431 = vmatprep.mubr.f32.mxu0 %v268_v38 }
  0x8b   : > { %975 = vmatpush1.bf16.msra.mxu1 %v974_v9 }
  0x8c   : > { %977 = vmatprep.subr.bf16.mxu1 %v976_v12 }
  0x8d   : > { %432 = vmatmul.mubr.f32.gmra.mrb[4].mxu0 %v267_v39 }
  0x8e   : > { %437 = vmatprep.mubr.f32.mxu0 %v270_v40 }
  0x8f   : > { %979 = vmatpush1.bf16.msra.mxu1 %v978_v15 }
  0x91   : > { %438 = vmatmul.mubr.f32.gmra.mrb[6].mxu0 %v269_v41 }
  0x92   : > { %443 = vmatprep.mubr.f32.mxu0 %v272_v42 }
  0x95   : > { %444 = vmatmul.mubr.f32.gmra.mrb[8].mxu0 %v271_v43 }
  0x96   : > { %449 = vmatprep.mubr.f32.mxu0 %v274_v44 }
  0x99   : > { %450 = vmatmul.mubr.f32.gmra.mrb[10].mxu0 %v273_v45 }
  0x9a   : > { %455 = vmatprep.mubr.f32.mxu0 %v276_v46 }
  0x9d   : > { %456 = vmatmul.mubr.f32.gmra.mrb[12].mxu0 %v275_v47 }
  0x9e   : > { %461 = vmatprep.mubr.f32.mxu0 %v278_v48 }
  0xa1   : > { %462 = vmatmul.mubr.f32.gmra.mrb[14].mxu0 %v277_v49 }
 0x158   : > { %v421_v23 = vpop.f32.mrb[0].mxu0 }
 0x159   : > { %v422_v24 = vadd.f32 %v421_v23, %v1271_v21  ;;  %v423_v25 = vpop.f32.mrb[1].mxu0 }
 0x15a   : > { %v424_v26 = vadd.f32 %v423_v25, %v1275_v22 }
 0x15b   : > { %v484_v27 = vmul.f32 0.70710677, %v422_v24  ;;  %v468_v55 = vmul.f32 0.5, %v422_v24 }
 0x15c   : > { %v485_v28 = vmul.f32 0.70710677, %v424_v26  ;;  %v427_v29 = vpop.f32.mrb[2].mxu0  ;;  %v469_v53 = vmul.f32 0.5, %v424_v26 }
 0x15d   : > { %1011 = verf.f32 %v484_v27  ;;  %v428_v30 = vadd.f32 %v427_v29, %v1271_v21  ;;  %v429_v31 = vpop.f32.mrb[3].mxu0 }
 0x15e   : > { %1013 = verf.f32 %v485_v28  ;;  %v430_v32 = vadd.f32 %v429_v31, %v1275_v22 }
 0x15f   : > { %v486_v33 = vmul.f32 0.70710677, %v428_v30  ;;  %v470_v5 = vmul.f32 0.5, %v428_v30 }
 0x160   : > { %v487_v34 = vmul.f32 0.70710677, %v430_v32  ;;  %v433_v35 = vpop.f32.mrb[4].mxu0  ;;  %v471_v1 = vmul.f32 0.5, %v430_v32 }
 0x161   : > { %1015 = verf.f32 %v486_v33  ;;  %v434_v36 = vadd.f32 %v433_v35, %v1271_v21  ;;  %v435_v37 = vpop.f32.mrb[5].mxu0 }
 0x162   : > { %1017 = verf.f32 %v487_v34  ;;  %v436_v38 = vadd.f32 %v435_v37, %v1275_v22 }
 0x163   : > { %v488_v39 = vmul.f32 0.70710677, %v434_v36  ;;  %v472_v24 = vmul.f32 0.5, %v434_v36 }
 0x164   : > { %v489_v40 = vmul.f32 0.70710677, %v436_v38  ;;  %v439_v41 = vpop.f32.mrb[6].mxu0  ;;  %v473_v15 = vmul.f32 0.5, %v436_v38 }
 0x165   : > { %1019 = verf.f32 %v488_v39  ;;  %v1284_v42 = vadd.f32 %v439_v41, %v1271_v21  ;;  %v441_v43 = vpop.f32.mrb[7].mxu0 }
 0x166   : > { %1021 = verf.f32 %v489_v40  ;;  %v442_v44 = vadd.f32 %v441_v43, %v1275_v22 }
 0x167   : > { %v1012_v45 = vpop.eup %1011  ;;  %v490_v46 = vmul.f32 0.70710677, %v1284_v42  ;;  %v474_v36 = vmul.f32 0.5, %v1284_v42 }
 0x168   : > { %v1014_v47 = vpop.eup %1013  ;;  %v516_v48 = vadd.f32 1.0, %v1012_v45  ;;  %v491_v49 = vmul.f32 0.70710677, %v442_v44  ;;  %v445_v50 = vpop.f32.mrb[8].mxu0  ;;  %v475_v34 = vmul.f32 0.5, %v442_v44 }
 0x169   : > { %1023 = verf.f32 %v490_v46  ;;  %v1289_v51 = vadd.f32 %v445_v50, %v1271_v21  ;;  %v447_v52 = vpop.f32.mrb[9].mxu0  ;;  %v517_v54 = vadd.f32 1.0, %v1014_v47 }
 0x16a   : > { %1025 = verf.f32 %v491_v49  ;;  %v448_v56 = vadd.f32 %v447_v52, %v1275_v22  ;;  %v532_v0 = vmul.f32 %v516_v48, %v468_v55 }
 0x16b   : > { %v1016_v57 = vpop.eup %1015  ;;  %v492_v58 = vmul.f32 0.70710677, %v1289_v51  ;;  %v533_v59 = vmul.f32 %v517_v54, %v469_v53 }
 0x16c   : > { %v1018_v60 = vpop.eup %1017  ;;  %v518_v61 = vadd.f32 1.0, %v1016_v57  ;;  %v493_v62 = vmul.f32 0.70710677, %v448_v56  ;;  %v451_v63 = vpop.f32.mrb[10].mxu0  ;;  %v477_v44 = vmul.f32 0.5, %v448_v56 }
 0x16d   : > { %v519_v2 = vadd.f32 1.0, %v1018_v60  ;;  %1027 = verf.f32 %v492_v58  ;;  %v1294_v3 = vadd.f32 %v451_v63, %v1271_v21  ;;  %v453_v4 = vpop.f32.mrb[11].mxu0  ;;  %688 = vmatprep.mubr.f32.mxu1 %v533_v59 }
 0x16e   : > { %1029 = verf.f32 %v493_v62  ;;  %v454_v6 = vadd.f32 %v453_v4, %v1275_v22  ;;  %689 = vmatmul.mubr.f32.vlgmr.msra.gmra.mrb[0].mxu1 %v532_v0  ;;  %v534_v14 = vmul.f32 %v518_v61, %v470_v5 }
 0x16f   : > { %v1020_v7 = vpop.eup %1019  ;;  %v494_v8 = vmul.f32 0.70710677, %v1294_v3  ;;  %v535_v9 = vmul.f32 %v519_v2, %v471_v1  ;;  %v478_v57 = vmul.f32 0.5, %v1294_v3 }
 0x170   : > { %v1022_v10 = vpop.eup %1021  ;;  %v520_v11 = vadd.f32 1.0, %v1020_v7  ;;  %v495_v12 = vmul.f32 0.70710677, %v454_v6  ;;  %v457_v13 = vpop.f32.mrb[12].mxu0  ;;  %v479_v54 = vmul.f32 0.5, %v454_v6 }
 0x171   : > { %v521_v16 = vadd.f32 1.0, %v1022_v10  ;;  %1031 = verf.f32 %v494_v8  ;;  %v458_v19 = vadd.f32 %v457_v13, %v1271_v21  ;;  %v459_v23 = vpop.f32.mrb[13].mxu0  ;;  %694 = vmatprep.mubr.f32.mxu1 %v535_v9  ;;  %v612_v10 = vld [vmem:[%s1342_s4] sm:$0x3] }
 0x172   : > { %1033 = verf.f32 %v495_v12  ;;  %v460_v25 = vadd.f32 %v459_v23, %v1275_v22  ;;  %695 = vmatmul.mubr.f32.gmra.mrb[2].mxu1 %v534_v14  ;;  %v536_v33 = vmul.f32 %v520_v11, %v472_v24  ;;  %v617_v11 = vrot.slane %v612_v10, %v347_v18 }
 0x173   : > { %v1024_v26 = vpop.eup %1023  ;;  %v496_v27 = vmul.f32 0.70710677, %v458_v19  ;;  %v537_v28 = vmul.f32 %v521_v16, %v473_v15  ;;  %v480_v63 = vmul.f32 0.5, %v458_v19  ;;  %v621_v12 = vrot.slane %v612_v10, %v351_v20 }
 0x174   : > { %v1026_v29 = vpop.eup %1025  ;;  %v522_v30 = vadd.f32 1.0, %v1024_v26  ;;  %v497_v31 = vmul.f32 0.70710677, %v460_v25  ;;  %v463_v32 = vpop.f32.mrb[14].mxu0  ;;  %v481_v62 = vmul.f32 0.5, %v460_v25 }
 0x175   : > { %v523_v35 = vadd.f32 1.0, %v1026_v29  ;;  %1035 = verf.f32 %v496_v27  ;;  %v464_v37 = vadd.f32 %v463_v32, %v1271_v21  ;;  %v465_v38 = vpop.f32.mrb[15].mxu0  ;;  %700 = vmatprep.mubr.f32.mxu1 %v537_v28  ;;  %v476_v21 = vmul.f32 0.5, %v1289_v51 }
 0x176   : > { %1037 = verf.f32 %v497_v31  ;;  %v466_v39 = vadd.f32 %v465_v38, %v1275_v22  ;;  %701 = vmatmul.mubr.f32.gmra.mrb[4].mxu1 %v536_v33  ;;  %v538_v48 = vmul.f32 %v522_v30, %v474_v36 }
 0x177   : > { %v1028_v40 = vpop.eup %1027  ;;  %v498_v41 = vmul.f32 0.70710677, %v464_v37  ;;  %v539_v43 = vmul.f32 %v523_v35, %v475_v34  ;;  %v482_v3 = vmul.f32 0.5, %v464_v37 }
 0x178   : > { %v1030_v45 = vpop.eup %1029  ;;  %v524_v46 = vadd.f32 1.0, %v1028_v40  ;;  %v499_v47 = vmul.f32 0.70710677, %v466_v39  ;;  %v483_v6 = vmul.f32 0.5, %v466_v39 }
 0x179   : > { %v525_v49 = vadd.f32 1.0, %v1030_v45  ;;  %1039 = verf.f32 %v498_v41  ;;  %706 = vmatprep.mubr.f32.mxu1 %v539_v43 }
 0x17a   : > { %1041 = verf.f32 %v499_v47  ;;  %707 = vmatmul.mubr.f32.gmra.mrb[6].mxu1 %v538_v48  ;;  %v540_v53 = vmul.f32 %v524_v46, %v476_v21 }
 0x17b   : > { %v1032_v42 = vpop.eup %1031  ;;  %v541_v50 = vmul.f32 %v525_v49, %v477_v44 }
 0x17c   : > { %v1034_v52 = vpop.eup %1033  ;;  %v526_v22 = vadd.f32 1.0, %v1032_v42 }
 0x17d   : > { %v527_v55 = vadd.f32 1.0, %v1034_v52  ;;  %712 = vmatprep.mubr.f32.mxu1 %v541_v50 }
 0x17e   : > { %713 = vmatmul.mubr.f32.gmra.mrb[8].mxu1 %v540_v53  ;;  %v542_v61 = vmul.f32 %v526_v22, %v478_v57 }
 0x17f   : > { %v1036_v58 = vpop.eup %1035  ;;  %v543_v56 = vmul.f32 %v527_v55, %v479_v54 }
 0x180   : > { %v1038_v59 = vpop.eup %1037  ;;  %v528_v60 = vadd.f32 1.0, %v1036_v58 }
 0x181   : > { %v529_v51 = vadd.f32 1.0, %v1038_v59  ;;  %718 = vmatprep.mubr.f32.mxu1 %v543_v56 }
 0x182   : > { %719 = vmatmul.mubr.f32.gmra.mrb[10].mxu1 %v542_v61  ;;  %v544_v5 = vmul.f32 %v528_v60, %v480_v63 }
 0x183   : > { %v1040_v0 = vpop.eup %1039  ;;  %v545_v1 = vmul.f32 %v529_v51, %v481_v62 }
 0x184   : > { %v1042_v2 = vpop.eup %1041  ;;  %v530_v4 = vadd.f32 1.0, %v1040_v0 }
 0x185   : > { %v531_v7 = vadd.f32 1.0, %v1042_v2  ;;  %724 = vmatprep.mubr.f32.mxu1 %v545_v1 }
 0x186   : > { %725 = vmatmul.mubr.f32.gmra.mrb[12].mxu1 %v544_v5  ;;  %v546_v9 = vmul.f32 %v530_v4, %v482_v3 }
 0x187   : > { %v547_v8 = vmul.f32 %v531_v7, %v483_v6 }
 0x189   : > { %730 = vmatprep.mubr.f32.mxu1 %v547_v8 }
 0x18a   : > { %731 = vmatmul.mubr.f32.gmra.mrb[14].mxu1 %v546_v9 }
 0x241   : > { %v690_v13 = vpop.f32.mrb[0].mxu1 }
 0x242   : > { %v691_v14 = vadd.f32 %v690_v13, %v617_v11  ;;  %v692_v15 = vpop.f32.mrb[1].mxu1 }
 0x243   : > { %v693_v16 = vadd.f32 %v692_v15, %v621_v12 }
 0x244   : > { %737 = vst [vmem:[%s1317_s11] sm:$0xff] %v691_v14 }
 0x245   : > { %738 = vst [vmem:[%s1317_s11 + $0x8] sm:$0xff] %v693_v16  ;;  %v696_v17 = vpop.f32.mrb[2].mxu1 }
 0x246   : > { %v697_v18 = vadd.f32 %v696_v17, %v617_v11  ;;  %v698_v20 = vpop.f32.mrb[3].mxu1 }
 0x247   : > { %v699_v19 = vadd.f32 %v698_v20, %v621_v12 }
 0x248   : > { %739 = vst [vmem:[%s1317_s11 + $0x10] sm:$0xff] %v697_v18 }
 0x249   : > { %740 = vst [vmem:[%s1317_s11 + $0x18] sm:$0xff] %v699_v19  ;;  %v702_v23 = vpop.f32.mrb[4].mxu1 }
 0x24a   : > { %v703_v24 = vadd.f32 %v702_v23, %v617_v11  ;;  %v704_v25 = vpop.f32.mrb[5].mxu1 }
 0x24b   : > { %v705_v26 = vadd.f32 %v704_v25, %v621_v12 }
 0x24c   : > { %741 = vst [vmem:[%s1317_s11 + $0x20] sm:$0xff] %v703_v24 }
 0x24d   : > { %742 = vst [vmem:[%s1317_s11 + $0x28] sm:$0xff] %v705_v26  ;;  %v708_v27 = vpop.f32.mrb[6].mxu1 }
 0x24e   : > { %v709_v28 = vadd.f32 %v708_v27, %v617_v11  ;;  %v710_v29 = vpop.f32.mrb[7].mxu1 }
 0x24f   : > { %v711_v30 = vadd.f32 %v710_v29, %v621_v12 }
 0x250   : > { %743 = vst [vmem:[%s1317_s11 + $0x30] sm:$0xff] %v709_v28 }
 0x251   : > { %744 = vst [vmem:[%s1317_s11 + $0x38] sm:$0xff] %v711_v30  ;;  %v714_v31 = vpop.f32.mrb[8].mxu1 }
 0x252   : > { %v715_v32 = vadd.f32 %v714_v31, %v617_v11  ;;  %v716_v33 = vpop.f32.mrb[9].mxu1 }
 0x253   : > { %v717_v34 = vadd.f32 %v716_v33, %v621_v12 }
 0x254   : > { %745 = vst [vmem:[%s1317_s11 + $0x40] sm:$0xff] %v715_v32 }
 0x255   : > { %746 = vst [vmem:[%s1317_s11 + $0x48] sm:$0xff] %v717_v34  ;;  %v720_v35 = vpop.f32.mrb[10].mxu1 }
 0x256   : > { %v721_v37 = vadd.f32 %v720_v35, %v617_v11  ;;  %v722_v38 = vpop.f32.mrb[11].mxu1 }
 0x257   : > { %v723_v36 = vadd.f32 %v722_v38, %v621_v12 }
 0x258   : > { %747 = vst [vmem:[%s1317_s11 + $0x50] sm:$0xff] %v721_v37 }
 0x259   : > { %748 = vst [vmem:[%s1317_s11 + $0x58] sm:$0xff] %v723_v36  ;;  %v726_v39 = vpop.f32.mrb[12].mxu1 }
 0x25a   : > { %v727_v40 = vadd.f32 %v726_v39, %v617_v11  ;;  %v728_v41 = vpop.f32.mrb[13].mxu1 }
 0x25b   : > { %v729_v43 = vadd.f32 %v728_v41, %v621_v12 }
 0x25c   : > { %749 = vst [vmem:[%s1317_s11 + $0x60] sm:$0xff] %v727_v40 }
 0x25d   : > { %750 = vst [vmem:[%s1317_s11 + $0x68] sm:$0xff] %v729_v43  ;;  %v732_v45 = vpop.f32.mrb[14].mxu1 }
 0x25e   : > { %v733_v46 = vadd.f32 %v732_v45, %v617_v11  ;;  %v734_v47 = vpop.f32.mrb[15].mxu1 }
 0x25f   : > { %v735_v48 = vadd.f32 %v734_v47, %v621_v12 }
 0x260   : > { %751 = vst [vmem:[%s1317_s11 + $0x70] sm:$0xff] %v733_v46 }
 0x261   : > { %752 = vst [vmem:[%s1317_s11 + $0x78] sm:$0xff] %v735_v48 }
 0x262 PF: > { %s17_s18 = sadd.s32 1, %s1113_s18  }
 0x263   : > { %p14_p7 = scmp.ge.s32.totalorder %s17_s18, 4  }
 0x265   :  { %16 = sbr.rel (!%p14_p7) target bundleno = 2 (0x2), region = 79 }
 0x26c   :  { %777 = vsyncpa [#allocation3], 1 }
 0x26d   :  { %779 = vsyncpa [#allocation3 + $0x1], 1 }
 0x26e   :  { %780 = vsyncpa [#allocation5], 1 }

</bundles_post_ra>
